<compile_context>
chip_gen: v6e
topology: v6e:2x2x1
jax: 0.10.0
libtpu: 0.0.40
codegen_flags: <defaults>
</compile_context>

<pallas_src>
import jax
import jax.numpy as jnp
from jax.experimental import pallas as pl
from jax.experimental.pallas import tpu as pltpu


def _attention_kernel(os_ref, u_ref, z_ref, at_ref, s_ref, p_ref):
    # os_ref: (bt, S, eh)  streamed source hidden states (dominant HBM traffic)
    # u_ref : (bt, 1, eh)  folded query u = ht @ W, already in os dtype
    # z_ref : (bt, 1, eh)  context-vector output
    # at_ref: (bt, S)      attention-weight output (sublane/lane dense)
    # s_ref : (bt, 1, S)   f32 scratch   (scores relayout buffer)
    # p_ref : (bt, 1, S)   os-dtype scratch (attention relayout buffer)
    os_b = os_ref[...]

    # scores on the MXU, lane-major in S: (bt,1,eh) x (bt,S,eh) -> (bt,1,S)
    s_ref[...] = jnp.einsum('bqh,bsh->bqs', u_ref[...], os_b,
                            preferred_element_type=jnp.float32)

    # Re-read as a sublane-dense (bt, S) slab so the softmax runs at full vreg
    # occupancy (the (bt,1,S) matmul layout is only 1/8 occupied).  The VMEM
    # round trip is bt*S*4 bytes - noise next to the bt*S*eh os stream.
    scores = s_ref[:, 0, :]                                   # (bt, S) f32
    m = jnp.max(scores, axis=-1, keepdims=True)
    e = jnp.exp(scores - m)
    denom = jnp.sum(e, axis=-1, keepdims=True)
    rcp = pl.reciprocal(denom, approx=True)                   # EUP slot (cheap)
    rcp = rcp * (2.0 - denom * rcp)                           # one Newton step -> f32 exact
    attn = e * rcp                                            # (bt, S) f32

    at_ref[...] = attn.astype(at_ref.dtype)

    # Stage attn back as (bt,1,S) in the compute dtype for the second MXU pass.
    p_ref[:, 0, :] = attn.astype(p_ref.dtype)
    z = jnp.einsum('bqs,bsh->bqh', p_ref[...], os_b,
                   preferred_element_type=jnp.float32)        # (bt, 1, eh)
    z_ref[...] = z.astype(z_ref.dtype)


def _round_up(x, m):
    return -(-x // m) * m


def _chip_caps():
    """Best-effort generation detection -> (vmem_budget_bytes, dual_tensorcore)."""
    kind = ""
    try:
        kind = jax.devices()[0].device_kind.lower()
    except Exception:
        pass
    dual_tc = ("v7" in kind) or ("7x" in kind)          # v7x: 2 TensorCores / chip
    vmem_phys = (64 if dual_tc else 128) * 1024 * 1024  # 64 MiB per TC on v7x
    try:                                                # refine via hardware query
        cap = int(getattr(pltpu.get_tpu_info(), "vmem_capacity_bytes", 0))
        if cap > 0:
            vmem_phys = cap
    except Exception:
        pass
    # ~96 MiB budget on 128 MiB chips (v5e/v6e), ~48 MiB on v7x.
    return (3 * vmem_phys) // 4, dual_tc


def _tile_footprint_bytes(bt, S, eh, itemsize):
    """VMEM resident for one batch tile: double-buffered pipeline blocks +
    f32 softmax intermediates + relayout scratch, with (8,128) padding."""
    s_sub = _round_up(S, 8)
    s_lane = _round_up(S, 128)
    eh_lane = _round_up(eh, 128)
    dbl = 2                                                   # pipeline double-buffering
    os_bytes = dbl * bt * s_sub * eh_lane * itemsize          # streamed os tile
    u_bytes = dbl * bt * 8 * eh_lane * itemsize               # (bt,1,eh) query tile
    z_bytes = dbl * bt * 8 * eh_lane * itemsize               # (bt,1,eh) output tile
    at_bytes = dbl * _round_up(bt, 8) * s_lane * itemsize     # (bt,S) output tile
    scratch = bt * 8 * s_lane * (4 + itemsize)                # s_ref + p_ref
    live_f32 = 4 * _round_up(bt, 8) * s_lane * 4 + bt * 8 * eh_lane * 4
    return os_bytes + u_bytes + z_bytes + at_bytes + scratch + live_f32


def _pick_batch_tile(B_os, S, eh, itemsize, vmem_budget, dual_tc):
    """Largest batch tile (divisor of the os batch) whose resident footprint fits
    the per-generation VMEM budget.  Prefers sublane-aligned tiles (or the full
    os batch) and, on dual-TensorCore chips, an even number of parallel steps."""
    cands = [d for d in range(1, B_os + 1) if B_os % d == 0]
    fitting = [d for d in cands
               if _tile_footprint_bytes(d, S, eh, itemsize) <= vmem_budget]
    if not fitting:
        # TODO(synk): for sequences too long to hold even a (1, S, eh) tile (v7x,
        # 64 MiB VMEM), add an S-tiled grid axis with an online (flash-style)
        # softmax instead of this single-row fallback.
        fitting = [1]
    sub = max(8, 32 // itemsize)                 # 8 sublanes f32, 16 bf16
    preferred = [d for d in fitting if d % sub == 0 or d == B_os] or fitting
    if dual_tc:
        balanced = [d for d in preferred
                    if (B_os // d) >= 2 and (B_os // d) % 2 == 0]
        if balanced:
            return max(balanced)
    return max(preferred)


def attention_forward(os, ht, weight, bias, decoder_bidirectional=False):
    """Forward pass of torchlake Attention.

    os:     (B_os, S, eh)  source hidden states
    ht:     (D, B, dh)     decoder hidden-state stack (layer-major, as in PyTorch)
    weight: (decode_dim, encode_dim), bias: (decode_dim,)  nn.Linear params
    Returns (z: (B, 1, eh), attentions: (B, S)).

    Note: `bias` is mathematically inert here - it shifts every score of a row by
    the same constant, and softmax is shift-invariant - so it is not streamed.
    """
    top = 2 if decoder_bidirectional else 1
    B_os, S, eh = os.shape
    # glue (pure XLA): select top layer(s), (top, B, dh) -> (B, top*dh)
    ht_flat = jnp.transpose(ht[:top], (1, 0, 2)).reshape(ht.shape[1], -1)
    B = ht_flat.shape[0]
    assert B % B_os == 0, "ht batch must be an integer multiple of os batch"
    rep = B // B_os

    # Algebraic fold of the linear layer into a per-row query:
    #   scores[b, s] = os[b % B_os, s, :] . (ht[b] @ W)
    u = jnp.dot(ht_flat.astype(jnp.float32), weight.astype(jnp.float32))
    u = u.astype(os.dtype).reshape(B, 1, eh)      # matmul-ready, halves DMA bytes for bf16

    itemsize = jnp.dtype(os.dtype).itemsize
    vmem_budget, dual_tc = _chip_caps()
    bt = _pick_batch_tile(B_os, S, eh, itemsize, vmem_budget, dual_tc)
    nos_blocks = B_os // bt

    # Grid = (parallel os-block axis, arbitrary repeat axis).  The os index_map is
    # invariant along the inner axis, so each os block is fetched from HBM once and
    # stays VMEM-resident for all `rep` decoder rows that reuse it.
    z, attn = pl.pallas_call(
        _attention_kernel,
        out_shape=(
            jax.ShapeDtypeStruct((B, 1, eh), os.dtype),
            jax.ShapeDtypeStruct((B, S), os.dtype),
        ),
        grid_spec=pltpu.PrefetchScalarGridSpec(
            num_scalar_prefetch=0,
            grid=(nos_blocks, rep),
            in_specs=[
                pl.BlockSpec((bt, S, eh), lambda k, j: (k, 0, 0)),           # os (resident over j)
                pl.BlockSpec((bt, 1, eh), lambda k, j: (k + j * nos_blocks, 0, 0)),  # u
            ],
            out_specs=[
                pl.BlockSpec((bt, 1, eh), lambda k, j: (k + j * nos_blocks, 0, 0)),  # z
                pl.BlockSpec((bt, S), lambda k, j: (k + j * nos_blocks, 0)),         # attn
            ],
            scratch_shapes=[
                pltpu.VMEM((bt, 1, S), jnp.float32),   # scores relayout buffer
                pltpu.VMEM((bt, 1, S), os.dtype),      # attn relayout buffer
            ],
        ),
        compiler_params=pltpu.CompilerParams(
            dimension_semantics=("parallel", "arbitrary"),
            vmem_limit_bytes=int(vmem_budget),
        ),
    )(os, u)

    return z, attn


def _reference(os, ht, weight, bias, decoder_bidirectional=False):
    # Unfolded reference mirroring the PyTorch module exactly (bias included).
    top = 2 if decoder_bidirectional else 1
    ht_flat = jnp.transpose(ht[:top], (1, 0, 2)).reshape(ht.shape[1], -1)
    if ht_flat.shape[0] != os.shape[0]:
        os = jnp.tile(os, (ht_flat.shape[0] // os.shape[0], 1, 1))
    proj = jnp.einsum('bsh,dh->bsd', os, weight) + bias
    scores = jnp.einsum('bd,bsd->bs', ht_flat, proj)
    attn = jax.nn.softmax(scores, axis=-1)
    z = jnp.einsum('bs,bsh->bh', attn, os)[:, None, :]
    return z, attn


if __name__ == "__main__":
    def make_case(key, B_os, B, S, eh, dh, bidir):
        D = 2 if bidir else 1
        dd = (2 * dh) if bidir else dh
        k_os, k_ht, k_w, k_b = jax.random.split(key, 4)
        os_ = jax.random.normal(k_os, (B_os, S, eh), dtype=jnp.float32)
        ht_ = jax.random.normal(k_ht, (D, B, dh), dtype=jnp.float32)
        bound = 1.0 / (eh ** 0.5)
        w_ = jax.random.uniform(k_w, (dd, eh), minval=-bound, maxval=bound,
                                dtype=jnp.float32)
        b_ = jax.random.uniform(k_b, (dd,), minval=-bound, maxval=bound,
                                dtype=jnp.float32)
        return os_, ht_, w_, b_

    k1, k2 = jax.random.split(jax.random.PRNGKey(0))

    # case 1: unidirectional decoder, ht batch == os batch
    os1, ht1, w1, b1 = make_case(k1, B_os=2, B=2, S=8, eh=32, dh=32, bidir=False)
    z1, a1 = attention_forward(os1, ht1, w1, b1, decoder_bidirectional=False)
    jax.block_until_ready((z1, a1))
    z1r, a1r = _reference(os1, ht1, w1, b1, decoder_bidirectional=False)
    assert z1.shape == (2, 1, 32) and a1.shape == (2, 8)
    # W-into-ht fold re-associates the f32 contraction -> tight but not bitwise.
    assert jnp.allclose(z1, z1r, atol=1e-4, rtol=1e-4)
    assert jnp.allclose(a1, a1r, atol=1e-4, rtol=1e-4)

    # case 2: bidirectional decoder, ht batch = 2 x os batch (os block reused in VMEM)
    os2, ht2, w2, b2 = make_case(k2, B_os=8, B=16, S=16, eh=32, dh=32, bidir=True)
    z2, a2 = attention_forward(os2, ht2, w2, b2, decoder_bidirectional=True)
    jax.block_until_ready((z2, a2))
    z2r, a2r = _reference(os2, ht2, w2, b2, decoder_bidirectional=True)
    assert z2.shape == (16, 1, 32) and a2.shape == (16, 16)
    assert jnp.allclose(z2, z2r, atol=1e-4, rtol=1e-4)
    assert jnp.allclose(a2, a2r, atol=1e-4, rtol=1e-4)

    print("KERNEL_OK")
</pallas_src>

<mosaic_0001>
module attributes {stable_mosaic.version = 11 : i64} {
  func.func @_attention_kernel(%arg0: i32, %arg1: i32, %arg2: memref<2x8x32xf32, #tpu.memory_space<vmem>>, %arg3: memref<2x1x32xf32, #tpu.memory_space<vmem>>, %arg4: memref<2x1x32xf32, #tpu.memory_space<vmem>>, %arg5: memref<2x8xf32, #tpu.memory_space<vmem>>, %arg6: memref<2x1x8xf32, #tpu.memory_space<vmem>>, %arg7: memref<2x1x8xf32, #tpu.memory_space<vmem>>) attributes {dimension_semantics = [#tpu.dimension_semantics<parallel>, #tpu.dimension_semantics<arbitrary>], iteration_bounds = array<i64: 1, 1>, scalar_prefetch = 0 : i64, scratch_operands = 2 : i64, tpu.core_type = #tpu.core_type<tc>, window_params = [{transform_indices = @transform_0, window_bounds = array<i64: 2, 8, 32>}, {transform_indices = @transform_1, window_bounds = array<i64: 2, 1, 32>}, {transform_indices = @transform_2, window_bounds = array<i64: 2, 1, 32>}, {transform_indices = @transform_3, window_bounds = array<i64: 2, 8>}]} {
    %c0 = arith.constant 0 : index
    %c0_0 = arith.constant 0 : index
    %c0_1 = arith.constant 0 : index
    %0 = vector.load %arg2[%c0, %c0_0, %c0_1] : memref<2x8x32xf32, #tpu.memory_space<vmem>>, vector<2x8x32xf32>
    %c0_2 = arith.constant 0 : index
    %c0_3 = arith.constant 0 : index
    %c0_4 = arith.constant 0 : index
    %1 = vector.load %arg3[%c0_2, %c0_3, %c0_4] : memref<2x1x32xf32, #tpu.memory_space<vmem>>, vector<2x1x32xf32>
    "tpu.trace_start"() <{level = 10 : i32, message = "bqh,bsh->bqs"}> : () -> ()
    %cst = arith.constant dense<0.000000e+00> : vector<2x1x8xf32>
    %2 = tpu.matmul %1, %0, %cst {dimension_numbers = #tpu.dot_dimension_numbers<[2], [2], [1], [1], [0, 0, 0, 1, 1, 1], [0], [0]>} : vector<2x1x32xf32>, vector<2x8x32xf32>, vector<2x1x8xf32> -> vector<2x1x8xf32>
    "tpu.trace_stop"() : () -> ()
    %c0_5 = arith.constant 0 : index
    %c0_6 = arith.constant 0 : index
    %c0_7 = arith.constant 0 : index
    %3 = vector.load %arg6[%c0_5, %c0_6, %c0_7] : memref<2x1x8xf32, #tpu.memory_space<vmem>>, vector<2x1x8xf32>
    tpu.vector_store %arg6[%c0_5, %c0_6, %c0_7], %2 {strides = array<i32>} : memref<2x1x8xf32, #tpu.memory_space<vmem>>, vector<2x1x8xf32>,
    %c0_8 = arith.constant 0 : index
    %c0_9 = arith.constant 0 : index
    %c0_10 = arith.constant 0 : index
    %4 = vector.load %arg6[%c0_8, %c0_9, %c0_10] : memref<2x1x8xf32, #tpu.memory_space<vmem>>, vector<2x1x8xf32>
    %5 = vector.shape_cast %4 : vector<2x1x8xf32> to vector<2x8xf32>
    %cst_11 = arith.constant dense<0xFF800000> : vector<2xf32>
    %6 = vector.multi_reduction <maximumf>, %5, %cst_11 [1] : vector<2x8xf32> to vector<2xf32>
    %7 = vector.shape_cast %6 : vector<2xf32> to vector<2x1xf32>
    %8 = vector.broadcast %7 : vector<2x1xf32> to vector<2x8xf32>
    %9 = arith.subf %5, %8 : vector<2x8xf32>
    %10 = math.exp %9 : vector<2x8xf32>
    %cst_12 = arith.constant dense<0.000000e+00> : vector<2xf32>
    %11 = vector.multi_reduction <add>, %10, %cst_12 [1] : vector<2x8xf32> to vector<2xf32>
    %12 = vector.shape_cast %11 : vector<2xf32> to vector<2x1xf32>
    %13 = tpu.reciprocal %12 {approx = true} : vector<2x1xf32> -> vector<2x1xf32>
    %14 = arith.mulf %12, %13 : vector<2x1xf32>
    %cst_13 = arith.constant 2.000000e+00 : f32
    %15 = vector.broadcast %cst_13 : f32 to vector<2x1xf32>
    %16 = arith.subf %15, %14 : vector<2x1xf32>
    %17 = arith.mulf %13, %16 : vector<2x1xf32>
    %18 = vector.broadcast %17 : vector<2x1xf32> to vector<2x8xf32>
    %19 = arith.mulf %10, %18 : vector<2x8xf32>
    %c0_14 = arith.constant 0 : index
    %c0_15 = arith.constant 0 : index
    %20 = vector.load %arg5[%c0_14, %c0_15] : memref<2x8xf32, #tpu.memory_space<vmem>>, vector<2x8xf32>
    tpu.vector_store %arg5[%c0_14, %c0_15], %19 {strides = array<i32>} : memref<2x8xf32, #tpu.memory_space<vmem>>, vector<2x8xf32>,
    %c0_16 = arith.constant 0 : index
    %c0_17 = arith.constant 0 : index
    %c0_18 = arith.constant 0 : index
    %21 = vector.load %arg7[%c0_16, %c0_17, %c0_18] : memref<2x1x8xf32, #tpu.memory_space<vmem>>, vector<2x1x8xf32>
    %22 = vector.shape_cast %21 : vector<2x1x8xf32> to vector<2x8xf32>
    %23 = vector.shape_cast %19 : vector<2x8xf32> to vector<2x1x8xf32>
    tpu.vector_store %arg7[%c0_16, %c0_17, %c0_18], %23 {strides = array<i32>} : memref<2x1x8xf32, #tpu.memory_space<vmem>>, vector<2x1x8xf32>,
    %c0_19 = arith.constant 0 : index
    %c0_20 = arith.constant 0 : index
    %c0_21 = arith.constant 0 : index
    %24 = vector.load %arg7[%c0_19, %c0_20, %c0_21] : memref<2x1x8xf32, #tpu.memory_space<vmem>>, vector<2x1x8xf32>
    "tpu.trace_start"() <{level = 10 : i32, message = "bqs,bsh->bqh"}> : () -> ()
    %cst_22 = arith.constant dense<0.000000e+00> : vector<2x1x32xf32>
    %25 = tpu.matmul %24, %0, %cst_22 {dimension_numbers = #tpu.dot_dimension_numbers<[2], [1], [1], [2], [0, 0, 0, 1, 1, 2], [0], [0]>} : vector<2x1x8xf32>, vector<2x8x32xf32>, vector<2x1x32xf32> -> vector<2x1x32xf32>
    "tpu.trace_stop"() : () -> ()
    %c0_23 = arith.constant 0 : index
    %c0_24 = arith.constant 0 : index
    %c0_25 = arith.constant 0 : index
    %26 = vector.load %arg4[%c0_23, %c0_24, %c0_25] : memref<2x1x32xf32, #tpu.memory_space<vmem>>, vector<2x1x32xf32>
    tpu.vector_store %arg4[%c0_23, %c0_24, %c0_25], %25 {strides = array<i32>} : memref<2x1x32xf32, #tpu.memory_space<vmem>>, vector<2x1x32xf32>,
    return
  }
  func.func @transform_0(%arg0: i32, %arg1: i32) -> (i32, i32, i32) {
    %c0_i32 = arith.constant 0 : i32
    %c0_i32_0 = arith.constant 0 : i32
    %c0_i32_1 = arith.constant 0 : i32
    return %arg0, %c0_i32, %c0_i32_0 : i32, i32, i32
  }
  func.func @transform_1(%arg0: i32, %arg1: i32) -> (i32, i32, i32) {
    %c1_i32 = arith.constant 1 : i32
    %0 = arith.muli %arg1, %c1_i32 : i32
    %1 = arith.addi %arg0, %0 : i32
    %c0_i32 = arith.constant 0 : i32
    %c0_i32_0 = arith.constant 0 : i32
    %c0_i32_1 = arith.constant 0 : i32
    return %1, %c0_i32, %c0_i32_0 : i32, i32, i32
  }
  func.func @transform_2(%arg0: i32, %arg1: i32) -> (i32, i32, i32) {
    %c1_i32 = arith.constant 1 : i32
    %0 = arith.muli %arg1, %c1_i32 : i32
    %1 = arith.addi %arg0, %0 : i32
    %c0_i32 = arith.constant 0 : i32
    %c0_i32_0 = arith.constant 0 : i32
    %c0_i32_1 = arith.constant 0 : i32
    return %1, %c0_i32, %c0_i32_0 : i32, i32, i32
  }
  func.func @transform_3(%arg0: i32, %arg1: i32) -> (i32, i32) {
    %c1_i32 = arith.constant 1 : i32
    %0 = arith.muli %arg1, %c1_i32 : i32
    %1 = arith.addi %arg0, %0 : i32
    %c0_i32 = arith.constant 0 : i32
    %c0_i32_0 = arith.constant 0 : i32
    return %1, %c0_i32 : i32, i32
  }
}

</mosaic_0001>

<bundles_post_ra>
// kernel: tpu_custom_call.1
= control target key start
LH: loop header
LB: loop body
LE: loop exit
PB: predicated region body
PF: predicated region fallthrough
CT: control target
= control target key end

     0   :  { %9 = vsyncpa [#allocation5], 0  ;;  %s702_s0 = inlined_call_operand.hbm [shape: f32[2,8,32], index: 0, kind: input, shape index: {}]   ;;  %s703_s1 = inlined_call_operand.hbm [shape: f32[2,1,32], index: 1, kind: input, shape index: {}]   ;;  %s704_s2 = inlined_call_operand.hbm [shape: f32[2,1,32], index: 2, kind: output, shape index: {0}]   ;;  %s705_s3 = inlined_call_operand.hbm [shape: f32[2,8], index: 3, kind: output, shape index: {1}]  }
   0x1   :  { %10 = vsyncpa [#allocation8], 0 }
   0x2   :  { %11 = vsyncpa [#allocation6], 0 }
   0x3   :  { %12 = vsyncpa [#allocation11], 0  ;;  %s642_s12 = smov [#allocation4]  }
   0x4   :  { %s18_s13 = sshll.u32 %s642_s12, 4  ;;  %s19_s13 = int_to_ptr.vmem [resolvable:$true] %s18_s13 }
   0x5   :  { %s562_s14 = scalar_lea.vmem %s19_s13, 256  ;;  %p567_p1 = scmp.lt.s32.totalorder %s19_s13, %s19_s13 }
   0x6   :  { %p563_p0 = scmp.ne.s32.totalorder %s19_s13, %s562_s14  ;;  %p568_p2 = scmp.lt.s32.totalorder %s562_s14, %s562_s14 }
   0x8   :  { %p569_p3 = por %p568_p2, %p567_p1 }
   0xa   :  { %p570_p4 = pnand %p569_p3, %p563_p0 }
   0xc   :  { %573 = shalt.err (!%p570_p4)
}
   0xd   :  { %s643_s15 = smov 128   ;;  %s644_s16 = smov 8  }
   0xe   :  { %24 = dma.hbm_to_vmem [thread:$0]  %s702_s0, 256, %s19_s13, [#allocation5], %s643_s15, %s643_s15, %s644_s16  }
   0xf   :  { %s645_s19 = smov [#allocation7]  }
  0x10   :  { %s34_s20 = sshll.u32 %s645_s19, 4  ;;  %s35_s20 = int_to_ptr.vmem [resolvable:$true] %s34_s20 }
  0x11   :  { %s582_s21 = scalar_lea.vmem %s35_s20, 32  ;;  %p587_p6 = scmp.lt.s32.totalorder %s35_s20, %s35_s20 }
  0x12   :  { %p583_p5 = scmp.ne.s32.totalorder %s35_s20, %s582_s21  ;;  %p588_p7 = scmp.lt.s32.totalorder %s582_s21, %s582_s21 }
  0x14   :  { %p589_p8 = por %p588_p7, %p587_p6 }
  0x16   :  { %p590_p9 = pnand %p589_p8, %p583_p5 }
  0x18   :  { %593 = shalt.err (!%p590_p9)
}
  0x19   :  { %s646_s22 = smov 16   ;;  %s647_s23 = smov 1  }
  0x1a   :  { %40 = dma.hbm_to_vmem [thread:$0]  %s703_s1, 32, %s35_s20, [#allocation8], %s646_s22, %s646_s22, %s647_s23  }
  0x1b   :  { %634 = dma.done.wait [#allocation5], 256  }
  0x1c   :  { %635 = vsyncadd [#allocation5], 4294967040 }
  0x1d   :  { %636 = dma.done.wait [#allocation8], 32  }
  0x1e   :  { %637 = vsyncadd [#allocation8], 4294967264  ;;  %v648_v0 = vmov 0.0   ;;  %vm649_vm0 = vmmov 0   ;;  %vm56_vm1 = vcmask 261120   ;;  %v52_v1 = vld [vmem:[#allocation4] sm:$0xff]  ;;  %v220_v7 = vlaneseq }
  0x1f   :  { %517 = vmatprep.subr.mxu0 %v648_v0  ;;  %522 = vmatprep.subr.mxu1 %v648_v0  ;;  %v53_v2 = vld [vmem:[#allocation4 + $0x8] sm:$0xff]  ;;  %v54_v3 = vld [vmem:[#allocation7] sm:$0x1]  ;;  %v55_v4 = vld [vmem:[#allocation7 + $0x1] sm:$0x1]  ;;  %vm209_vm2 = vcmask 57344  }
  0x20   :  { %519 = vmatprep.mubr.msk.f32.mxu0 %vm649_vm0, %v648_v0  ;;  %524 = vmatprep.mubr.msk.f32.mxu1 %vm649_vm0, %v648_v0  ;;  %v650_v5 = vmov 1966171168   ;;  %v221_v13 = vshrl.u32 %v220_v7, 7  ;;  %vm232_vm3 = vcmask 58368   ;;  %vm314_vm4 = vcmask 64512   ;;  %s651_s0 = smov [#allocation10]  }
  0x21   :  { %518 = vmatpush3.xpose.msk.msra.mxu0 %vm56_vm1, %v52_v1  ;;  %523 = vmatpush3.xpose.msk.msra.mxu1 %vm56_vm1, %v53_v2  ;;  %v218_v6 = vunpack.c.l.s4 %v650_v5  ;;  %s489_s1 = sshll.u32 %s651_s0, 4  ;;  %s490_s1 = int_to_ptr.vmem [resolvable:$true] %s489_s1 }
  0x22   :  { %527 = vmatprep.subr.mxu0 %v648_v0  ;;  %532 = vmatprep.subr.mxu1 %v648_v0  ;;  %v239_v21 = vsub.s32 0, %v221_v13  ;;  %v243_v22 = vsub.s32 1, %v221_v13  ;;  %s594_s26 = scalar_lea.vmem %s490_s1, 32  ;;  %p599_p11 = scmp.lt.s32.totalorder %s490_s1, %s490_s1 }
  0x23   :  { %v219_v12 = vunpack.c.0.s8 %v218_v6  ;;  %p595_p10 = scmp.ne.s32.totalorder %s490_s1, %s594_s26  ;;  %p600_p12 = scmp.lt.s32.totalorder %s594_s26, %s594_s26 }
  0x24   :  { %520 = vmatmul.mubr.msk.f32.vlgmr.msra.gmra.mxu0 %vm56_vm1, %v54_v3  ;;  %525 = vmatmul.mubr.msk.f32.vlgmr.msra.gmra.mxu1 %vm56_vm1, %v55_v4 }
  0x25   :  { %528 = vmatpush3.msra.mxu0 %v52_v1  ;;  %533 = vmatpush3.msra.mxu1 %v53_v2  ;;  %v222_v14 = vsub.s32 %v219_v12, %v221_v13  ;;  %p601_p13 = por %p600_p12, %p599_p11 }
  0x26   :  { %529 = vmatprep.mubr.msk.f32.mxu0 %vm649_vm0, %v648_v0  ;;  %534 = vmatprep.mubr.msk.f32.mxu1 %vm649_vm0, %v648_v0 }
  0x27   :  { %p602_p0 = pnand %p601_p13, %p595_p10 }
  0xe4   :  { %v129_v8 = vpop.f32.mrf.mxu0  ;;  %v205_v9 = vpop.f32.mrf.mxu1 }
  0xe5   :  { %210 = vst.msk [vmem:[#allocation2] sm:$0x1] %vm209_vm2, %v129_v8  ;;  %211 = vst.msk [vmem:[#allocation2 + $0x1] sm:$0x1] %vm209_vm2, %v205_v9 }
  0xe6   :  { %v521_v10 = vpop.f32.mrf.mxu0  ;;  %v526_v11 = vpop.f32.mrf.mxu1 }
  0xec   :  { %v212_v15 = vld [vmem:[#allocation2] sm:$0x1]  ;;  %v213_v16 = vld [vmem:[#allocation2 + $0x1] sm:$0x1] }
  0xed   :  { %v216_v17 = vcombine.low %v212_v15, %v213_v16 }
  0xef   :  { %v223_v18 = vrot.slane %v216_v17, %v222_v14 }
  0xf1   :  { %v230_v19 = vrot.slane %v223_v18, %v222_v14 }
  0xf3   :  { %v233_v20 = vsel %vm232_vm3, %v230_v19, -inf }
  0xf4   :  { %234 = vmax.xlane.f32.xlu0 %v233_v20 }
 0x17d   :  { %v235_v23 = vpop.xlane.xlu0 %234 }
 0x17e   :  { %v240_v24 = vrot.slane %v235_v23, %v239_v21  ;;  %v244_v25 = vrot.slane %v235_v23, %v243_v22 }
 0x180   :  { %v247_v26 = vsub.f32 %v212_v15, %v240_v24  ;;  %v248_v27 = vsub.f32 %v213_v16, %v244_v25 }
 0x182   :  { %v249_v28 = vmul.f32 1.442695, %v247_v26  ;;  %v251_v29 = vmul.f32 1.442695, %v248_v27 }
 0x184   :  { %548 = vpow2.f32 %v249_v28 }
 0x185   :  { %550 = vpow2.f32 %v251_v29 }
 0x191   :  { %v549_v30 = vpop.eup %548 }
 0x192   :  { %v551_v31 = vpop.eup %550 }
 0x193   :  { %v255_v32 = vcombine.low %v549_v30, %v551_v31 }
 0x195   :  { %v262_v33 = vrot.slane %v255_v32, %v222_v14 }
 0x197   :  { %v269_v34 = vrot.slane %v262_v33, %v222_v14 }
 0x199   :  { %v271_v35 = vsel %vm232_vm3, %v269_v34, 0.0 }
 0x19a   :  { %272 = vadd.xlane.f32.xlu0 %v271_v35 }
 0x223   :  { %v273_v36 = vpop.xlane.xlu0 %272 }
 0x224   :  { %552 = vrcp.f32 %v273_v36 }
 0x231   :  { %v553_v37 = vpop.eup %552 }
 0x232   :  { %v275_v38 = vmul.f32 %v553_v37, %v273_v36 }
 0x234   :  { %v276_v39 = vsub.f32 2.0, %v275_v38 }
 0x236   :  { %v277_v40 = vmul.f32 %v553_v37, %v276_v39 }
 0x238   :  { %v282_v41 = vrot.slane %v277_v40, %v239_v21  ;;  %v286_v42 = vrot.slane %v277_v40, %v243_v22 }
 0x23a   :  { %v289_v43 = vmul.f32 %v549_v30, %v282_v41  ;;  %v290_v44 = vmul.f32 %v551_v31, %v286_v42 }
 0x23c   :  { %v293_v45 = vcombine.low %v289_v43, %v290_v44  ;;  %310 = vst.msk [vmem:[#allocation3] sm:$0x1] %vm209_vm2, %v289_v43  ;;  %311 = vst.msk [vmem:[#allocation3 + $0x1] sm:$0x1] %vm209_vm2, %v290_v44 }
 0x23e   :  { %v300_v46 = vrot.slane %v293_v45, %v222_v14 }
 0x240   :  { %v307_v47 = vrot.slane %v300_v46, %v222_v14 }
 0x242   :  { %309 = vst.msk [vmem:[#allocation10] sm:$0x3] %vm232_vm3, %v307_v47 }
 0x243   :  { %v312_v48 = vld [vmem:[#allocation3] sm:$0x1]  ;;  %v313_v49 = vld [vmem:[#allocation3 + $0x1] sm:$0x1] }
 0x244   :  { %530 = vmatmul.mubr.msk.f32.vlgmr.msra.gmra.mxu0 %vm314_vm4, %v312_v48  ;;  %535 = vmatmul.mubr.msk.f32.vlgmr.msra.gmra.mxu1 %vm314_vm4, %v313_v49 }
 0x245   :  { %605 = shalt.err (!%p602_p0)
}
 0x246   :  { %492 = dma.vmem_to_hbm [thread:$0]  %s490_s1, 32, %s705_s3, [#allocation11]   ;;  %vm461_vm5 = vcmask 253952  }
 0x247   :  { %s652_s29 = smov [#allocation9]  }
 0x248   :  { %s473_s30 = sshll.u32 %s652_s29, 4  ;;  %s474_s30 = int_to_ptr.vmem [resolvable:$true] %s473_s30 }
 0x249   :  { %s614_s4 = scalar_lea.vmem %s474_s30, 32  ;;  %p619_p2 = scmp.lt.s32.totalorder %s474_s30, %s474_s30 }
 0x24a   :  { %p615_p1 = scmp.ne.s32.totalorder %s474_s30, %s614_s4  ;;  %p620_p3 = scmp.lt.s32.totalorder %s614_s4, %s614_s4 }
 0x24c   :  { %p621_p4 = por %p620_p3, %p619_p2 }
 0x24e   :  { %p622_p5 = pnand %p621_p4, %p615_p1 }
 0x304   :  { %v384_v50 = vpop.f32.mrf.mxu0  ;;  %v457_v51 = vpop.f32.mrf.mxu1 }
 0x305   :  { %462 = vst.msk [vmem:[#allocation9] sm:$0x1] %vm461_vm5, %v384_v50  ;;  %463 = vst.msk [vmem:[#allocation9 + $0x1] sm:$0x1] %vm461_vm5, %v457_v51 }
 0x306   :  { %v531_v52 = vpop.f32.mrf.mxu0  ;;  %v536_v53 = vpop.f32.mrf.mxu1 }
 0x307   :  { %625 = shalt.err (!%p622_p5)
}
 0x308   :  { %479 = dma.vmem_to_hbm [thread:$0]  %s474_s30, 32, %s704_s2, [#allocation6], %s646_s22, %s646_s22, %s647_s23  }
 0x309   :  { %638 = dma.done.wait [#allocation6], 32  }
 0x30a   :  { %639 = vsyncadd [#allocation6], 4294967264 }
 0x30b   :  { %640 = dma.done.wait [#allocation11], 32  }
 0x30c   :  { %641 = vsyncadd [#allocation11], 4294967264 }
 0x30d   :  { %499 = vsyncpa [#allocation5], 1 }
 0x30e   :  { %500 = vsyncpa [#allocation8], 1 }
 0x30f   :  { %501 = vsyncpa [#allocation6], 1 }
 0x310   :  { %502 = vsyncpa [#allocation11], 1 }

</bundles_post_ra>
